<compile_context>
chip_gen: v7x
topology: tpu7x:2x2x1
jax: 0.10.0
libtpu: 0.0.40
codegen_flags: <defaults>
</compile_context>

<pallas_src>
import math
import numpy as np

import jax
import jax.numpy as jnp
from jax import lax
from jax.experimental import pallas as pl
from jax.experimental.pallas import tpu as pltpu


def _fsq_constants(levels, R, bound_eps=1e-3):
    """Precompute per-channel FSQ constants (numpy) that are passed as kernel inputs."""
    lv = np.asarray(levels, dtype=np.float32)                       # (C,)
    C = lv.shape[0]
    half_l = (lv - 1.0) * (1.0 + bound_eps) / 2.0
    offset = np.where(np.asarray(levels) % 2 == 0, 0.5, 0.0).astype(np.float32)
    shift = np.arctanh(offset / half_l).astype(np.float32)
    half_width = (np.asarray(levels) // 2).astype(np.float32)
    basis = np.concatenate([[1.0], np.cumprod(lv[:-1])]).astype(np.float32)

    # ResidualFSQ scales: scale_r = (levels - 1) ** (-r).  Fold the divides:
    #   z_r       = residual * inv_scale_r
    #   quantized = round(bound(z_r)) * qscale_r        (== codes * scale_r)
    inv_scale = np.stack([(lv - 1.0) ** r for r in range(R)], axis=1)                    # (C, R)
    qscale = np.stack([((lv - 1.0) ** (-r)) / half_width for r in range(R)], axis=1)     # (C, R)
    inv_scale = inv_scale.astype(np.float32)
    qscale = qscale.astype(np.float32)

    # Factorized index:  idx = front + n_front * back, with
    #   front = sum_{c <  split} (q_c + hw_c) * basis_c
    #   back  = sum_{c >= split} (q_c + hw_c) * basis_c / n_front
    split = max(1, C // 2)
    n_front = int(np.prod(np.asarray(levels)[:split]))
    n_back = int(np.prod(np.asarray(levels)[split:]))               # empty prod -> 1
    cidx = np.arange(C)
    basis_front = np.where(cidx < split, basis, 0.0).astype(np.float32)
    basis_back = np.where(cidx >= split, basis / float(n_front), 0.0).astype(np.float32)
    basis2 = np.stack([basis_front, basis_back], axis=0)             # (2, C)
    off_front = float(np.sum(half_width * basis_front))
    off_back = float(np.sum(half_width * basis_back))

    cconst = np.stack([half_l, offset, shift], axis=1).astype(np.float32)   # (C, 3)
    return cconst, inv_scale, qscale, basis2, off_front, off_back, n_front, n_back


def make_gfsq_kernel(R, n_front, n_back, off_front, off_back):
    """Fused per-(group, batch, time-tile) GFSQ kernel body (only scalars closed over)."""

    def kernel(x_ref, w_in_ref, b_in_ref, w_out_ref, b_out_ref,
               cconst_ref, inv_scale_ref, qscale_ref, basis2_ref,
               feat_ref, ind_ref, cnt_ref):
        # Zero the per-group histogram accumulator at the start of each group's
        # sweep over the (batch, time) grid axes.
        @pl.when(jnp.logical_and(pl.program_id(1) == 0, pl.program_id(2) == 0))
        def _():
            cnt_ref[...] = jnp.zeros_like(cnt_ref)

        x = x_ref[0]            # (Dg, tile_t)  channels on sublanes, time on lanes
        w_in = w_in_ref[0]      # (C, Dg)
        b_in = b_in_ref[0]      # (C, 1)
        w_out = w_out_ref[0]    # (Dg, C)
        b_out = b_out_ref[0]    # (Dg, 1)

        half_l = cconst_ref[:, 0:1]     # (C, 1)
        offset = cconst_ref[:, 1:2]     # (C, 1)
        shift = cconst_ref[:, 2:3]      # (C, 1)
        basis2 = basis2_ref[...]        # (2, C)

        tile_t = x.shape[1]
        iota_f = lax.broadcasted_iota(jnp.int32, (n_front, tile_t), 0)
        iota_b = lax.broadcasted_iota(jnp.int32, (n_back, tile_t), 0)

        # ResidualFSQ.project_in  (T-major: z = W_in @ x + b_in)
        z = jnp.dot(w_in, x, preferred_element_type=jnp.float32) + b_in     # (C, tile_t)

        residual = z
        quant_out = jnp.zeros_like(z)
        idx_rows = []
        cmats = []
        for r in range(R):                      # R is small & static -> unrolled
            inv_s = inv_scale_ref[:, r:r + 1]   # (C, 1)
            q_s = qscale_ref[:, r:r + 1]        # (C, 1)
            # FSQ.bound + round (round-half-to-even matches torch.round)
            bounded = jnp.tanh(residual * inv_s + shift) * half_l - offset
            q = jnp.round(bounded)              # (C, tile_t), integer-valued
            quantized = q * q_s                 # codes * scale_r
            residual = residual - quantized
            quant_out = quant_out + quantized

            # codes_to_indices, factorized into front/back digit groups through a
            # tiny MXU matmul with the split basis (no padded cross-lane sum).
            fb = jnp.dot(basis2, q, preferred_element_type=jnp.float32)     # (2, tile_t)
            front = jnp.round(fb[0:1, :] + off_front).astype(jnp.int32)     # (1, tile_t)
            back = jnp.round(fb[1:2, :] + off_back).astype(jnp.int32)       # (1, tile_t)
            idx_rows.append(front + n_front * back)

            # Factorized histogram: joint counts via MXU,
            #   cmat[b, f] = sum_t onehot_back[b, t] * onehot_front[f, t]
            oh_f = (iota_f == front).astype(jnp.float32)                    # (n_front, tile_t)
            oh_b = (iota_b == back).astype(jnp.float32)                     # (n_back, tile_t)
            cmats.append(lax.dot_general(
                oh_b, oh_f, (((1,), (1,)), ((), ())),
                preferred_element_type=jnp.float32))                        # (n_back, n_front)

        # ResidualFSQ.project_out  (lane-dense (Dg, tile_t) store)
        feat = jnp.dot(w_out, quant_out, preferred_element_type=jnp.float32) + b_out
        feat_ref[0] = feat.astype(feat_ref.dtype)
        ind_ref[0, 0] = jnp.concatenate(idx_rows, axis=0)                   # (R, tile_t) int32

        for r in range(R):
            cnt_ref[0, r] = cnt_ref[0, r] + cmats[r]

    return kernel


def gfsq_forward(x, params, levels, G, R, eps=1e-5, tile_t=None):
    """GFSQ.forward.  x: (B, D, T) float32.  Returns the 5-tuple of the PyTorch module."""
    B, D, T = x.shape
    assert D % G == 0
    Dg = D // G
    C = len(levels)
    n_ind = int(np.prod(levels))
    assert n_ind < (1 << 24), "f32 index arithmetic requires prod(levels) < 2**24"
    assert (Dg % 8 == 0) or (G == 1), "per-group channel count must be a multiple of 8"

    w_in, b_in, w_out, b_out = params   # (G,C,Dg), (G,C,1), (G,Dg,C), (G,Dg,1)
    assert w_in.shape == (G, C, Dg) and w_out.shape == (G, Dg, C)

    if tile_t is None:
        tile_t = next((t for t in (1024, 512, 256, 128) if T % t == 0), T)
    assert T % tile_t == 0
    n_t = T // tile_t

    (cconst, inv_scale, qscale, basis2,
     off_front, off_back, n_front, n_back) = _fsq_constants(levels, R)

    kernel = make_gfsq_kernel(R, n_front, n_back, off_front, off_back)

    feat, ind_raw, counts = pl.pallas_call(
        kernel,
        out_shape=(
            jax.ShapeDtypeStruct((B, D, T), x.dtype),                 # feat, final layout
            jax.ShapeDtypeStruct((G, B, R, T), jnp.int32),            # per-group indices
            jax.ShapeDtypeStruct((G, R, n_back, n_front), jnp.float32),  # histogram counts
        ),
        grid_spec=pltpu.PrefetchScalarGridSpec(
            num_scalar_prefetch=0,
            grid=(G, B, n_t),
            in_specs=[
                # x stays (B, D, T); the group's channel slice comes from the index_map.
                pl.BlockSpec((1, Dg, tile_t), lambda g, b, t: (b, g, t)),
                pl.BlockSpec((1, C, Dg), lambda g, b, t: (g, 0, 0)),
                pl.BlockSpec((1, C, 1), lambda g, b, t: (g, 0, 0)),
                pl.BlockSpec((1, Dg, C), lambda g, b, t: (g, 0, 0)),
                pl.BlockSpec((1, Dg, 1), lambda g, b, t: (g, 0, 0)),
                pl.BlockSpec((C, 3), lambda g, b, t: (0, 0)),
                pl.BlockSpec((C, R), lambda g, b, t: (0, 0)),
                pl.BlockSpec((C, R), lambda g, b, t: (0, 0)),
                pl.BlockSpec((2, C), lambda g, b, t: (0, 0)),
            ],
            out_specs=[
                pl.BlockSpec((1, Dg, tile_t), lambda g, b, t: (b, g, t)),
                pl.BlockSpec((1, 1, R, tile_t), lambda g, b, t: (g, b, 0, t)),
                pl.BlockSpec((1, R, n_back, n_front), lambda g, b, t: (g, 0, 0, 0)),
            ],
        ),
        compiler_params=pltpu.CompilerParams(
            dimension_semantics=("parallel", "arbitrary", "arbitrary")),
    )(x, w_in, b_in, w_out, b_out,
      jnp.asarray(cconst), jnp.asarray(inv_scale), jnp.asarray(qscale), jnp.asarray(basis2))

    # indices: (G, B, R, T) -> 'g b t r -> b t (g r)' then transpose(1, 2) -> (B, G*R, T)
    ind = jnp.transpose(ind_raw, (1, 0, 2, 3)).reshape(B, G * R, T)

    # perplexity from the accumulated factorized histogram (mean over the b, t dims)
    e_mean = counts.reshape(G * R, n_ind) / float(B * T)
    e_mean = e_mean / (jnp.sum(e_mean, axis=1, keepdims=True) + eps)
    perplexity = jnp.exp(-jnp.sum(e_mean * jnp.log(e_mean + eps), axis=1))

    zeros = jnp.zeros_like(perplexity).astype(x.dtype)
    # TODO(synk): round_ste backward (straight-through gradients) and training-time
    # quantizer dropout are not represented; this is the inference forward pass only.
    return zeros, feat, perplexity, None, ind


def init_params(key, dim, levels, G):
    """Deterministic synthetic weights for the per-group project_in/project_out Linears."""
    Dg = dim // G
    C = len(levels)
    k1, k2, k3, k4 = jax.random.split(key, 4)
    w_in = jax.random.normal(k1, (G, C, Dg), jnp.float32) / np.sqrt(Dg)    # Linear(Dg->C).weight
    b_in = 0.01 * jax.random.normal(k2, (G, C, 1), jnp.float32)
    w_out = jax.random.normal(k3, (G, Dg, C), jnp.float32) / np.sqrt(C)    # Linear(C->Dg).weight
    b_out = 0.01 * jax.random.normal(k4, (G, Dg, 1), jnp.float32)
    return w_in, b_in, w_out, b_out


if __name__ == "__main__":
    # GFSQ(dim=32, levels=(5,5,5,5), G=2, R=2)  -> n_ind = 625
    B, D, T = 2, 32, 256
    G, R = 2, 2
    levels = (5, 5, 5, 5)
    n_ind = int(np.prod(levels))

    key = jax.random.PRNGKey(0)
    kp, kx = jax.random.split(key)
    params = init_params(kp, D, levels, G)
    x = jax.random.normal(kx, (B, D, T), jnp.float32)

    fwd = jax.jit(lambda xx, pp: gfsq_forward(xx, pp, levels, G, R, tile_t=128))
    zeros, feat, perplexity, _none, ind = fwd(x, params)
    jax.block_until_ready((zeros, feat, perplexity, ind))

    assert zeros.shape == (G * R,)
    assert feat.shape == (B, D, T)
    assert perplexity.shape == (G * R,)
    assert ind.shape == (B, G * R, T)
    assert ind.dtype == jnp.int32
    assert bool(jnp.all((ind >= 0) & (ind < n_ind)))
    assert bool(jnp.all(jnp.isfinite(feat))) and bool(jnp.all(jnp.isfinite(perplexity)))

    # Internal consistency: the factorized in-kernel histogram must reproduce the
    # perplexity obtained from a plain one-hot histogram of the emitted indices.
    onehot = jax.nn.one_hot(jnp.transpose(ind, (0, 2, 1)), n_ind, dtype=jnp.float32)
    e_mean_ref = jnp.sum(onehot, axis=(0, 1)) / float(B * T)
    e_mean_ref = e_mean_ref / (jnp.sum(e_mean_ref, axis=1, keepdims=True) + 1e-5)
    perp_ref = jnp.exp(-jnp.sum(e_mean_ref * jnp.log(e_mean_ref + 1e-5), axis=1))
    assert bool(jnp.allclose(perplexity, perp_ref, rtol=1e-5, atol=1e-5))

    print("KERNEL_OK")
</pallas_src>

<mosaic_0001>
module attributes {stable_mosaic.version = 11 : i64} {
  func.func @kernel(%arg0: i32, %arg1: i32, %arg2: i32, %arg3: memref<1x16x128xf32, #tpu.memory_space<vmem>>, %arg4: memref<1x4x16xf32, #tpu.memory_space<vmem>>, %arg5: memref<1x4x1xf32, #tpu.memory_space<vmem>>, %arg6: memref<1x16x4xf32, #tpu.memory_space<vmem>>, %arg7: memref<1x16x1xf32, #tpu.memory_space<vmem>>, %arg8: memref<4x3xf32, #tpu.memory_space<vmem>>, %arg9: memref<4x2xf32, #tpu.memory_space<vmem>>, %arg10: memref<4x2xf32, #tpu.memory_space<vmem>>, %arg11: memref<2x4xf32, #tpu.memory_space<vmem>>, %arg12: memref<1x16x128xf32, #tpu.memory_space<vmem>>, %arg13: memref<1x1x2x128xi32, #tpu.memory_space<vmem>>, %arg14: memref<1x2x25x25xf32, #tpu.memory_space<vmem>>) attributes {dimension_semantics = [#tpu.dimension_semantics<parallel>, #tpu.dimension_semantics<arbitrary>, #tpu.dimension_semantics<arbitrary>], iteration_bounds = array<i64: 2, 2, 2>, scalar_prefetch = 0 : i64, scratch_operands = 0 : i64, tpu.core_type = #tpu.core_type<tc>, window_params = [{transform_indices = @transform_0, window_bounds = array<i64: 1, 16, 128>}, {transform_indices = @transform_1, window_bounds = array<i64: 1, 4, 16>}, {transform_indices = @transform_2, window_bounds = array<i64: 1, 4, 1>}, {transform_indices = @transform_3, window_bounds = array<i64: 1, 16, 4>}, {transform_indices = @transform_4, window_bounds = array<i64: 1, 16, 1>}, {pipeline_mode = #tpu.pipeline_mode<synchronous>, transform_indices = @transform_5, window_bounds = array<i64: 4, 3>}, {pipeline_mode = #tpu.pipeline_mode<synchronous>, transform_indices = @transform_6, window_bounds = array<i64: 4, 2>}, {pipeline_mode = #tpu.pipeline_mode<synchronous>, transform_indices = @transform_7, window_bounds = array<i64: 4, 2>}, {pipeline_mode = #tpu.pipeline_mode<synchronous>, transform_indices = @transform_8, window_bounds = array<i64: 2, 4>}, {transform_indices = @transform_9, window_bounds = array<i64: 1, 16, 128>}, {transform_indices = @transform_10, window_bounds = array<i64: 1, 1, 2, 128>}, {transform_indices = @transform_11, window_bounds = array<i64: 1, 2, 25, 25>}]} {
    %c0_i32 = arith.constant 0 : i32
    %0 = arith.cmpi eq, %arg1, %c0_i32 : i32
    %c0_i32_0 = arith.constant 0 : i32
    %1 = arith.cmpi eq, %arg2, %c0_i32_0 : i32
    %2 = arith.andi %0, %1 : i1
    %3 = arith.extui %2 : i1 to i32
    %c0_i32_1 = arith.constant 0 : i32
    %4 = arith.cmpi ne, %3, %c0_i32_1 : i32
    scf.if %4 {
      %cst_64 = arith.constant 0.000000e+00 : f32
      %124 = vector.broadcast %cst_64 : f32 to vector<1x2x25x25xf32>
      %c0_65 = arith.constant 0 : index
      %c0_66 = arith.constant 0 : index
      %c0_67 = arith.constant 0 : index
      %c0_68 = arith.constant 0 : index
      %125 = vector.load %arg14[%c0_65, %c0_66, %c0_67, %c0_68] : memref<1x2x25x25xf32, #tpu.memory_space<vmem>>, vector<1x2x25x25xf32>
      tpu.vector_store %arg14[%c0_65, %c0_66, %c0_67, %c0_68], %124 {strides = array<i32>} : memref<1x2x25x25xf32, #tpu.memory_space<vmem>>, vector<1x2x25x25xf32>,
    } else {
    }
    %c0 = arith.constant 0 : index
    %c0_2 = arith.constant 0 : index
    %c0_3 = arith.constant 0 : index
    %5 = vector.load %arg3[%c0, %c0_2, %c0_3] : memref<1x16x128xf32, #tpu.memory_space<vmem>>, vector<1x16x128xf32>
    %6 = vector.shape_cast %5 : vector<1x16x128xf32> to vector<16x128xf32>
    %c0_4 = arith.constant 0 : index
    %c0_5 = arith.constant 0 : index
    %c0_6 = arith.constant 0 : index
    %7 = vector.load %arg4[%c0_4, %c0_5, %c0_6] : memref<1x4x16xf32, #tpu.memory_space<vmem>>, vector<1x4x16xf32>
    %8 = vector.shape_cast %7 : vector<1x4x16xf32> to vector<4x16xf32>
    %c0_7 = arith.constant 0 : index
    %c0_8 = arith.constant 0 : index
    %c0_9 = arith.constant 0 : index
    %9 = vector.load %arg5[%c0_7, %c0_8, %c0_9] : memref<1x4x1xf32, #tpu.memory_space<vmem>>, vector<1x4x1xf32>
    %10 = vector.shape_cast %9 : vector<1x4x1xf32> to vector<4x1xf32>
    %c0_10 = arith.constant 0 : index
    %c0_11 = arith.constant 0 : index
    %c0_12 = arith.constant 0 : index
    %11 = vector.load %arg6[%c0_10, %c0_11, %c0_12] : memref<1x16x4xf32, #tpu.memory_space<vmem>>, vector<1x16x4xf32>
    %12 = vector.shape_cast %11 : vector<1x16x4xf32> to vector<16x4xf32>
    %c0_13 = arith.constant 0 : index
    %c0_14 = arith.constant 0 : index
    %c0_15 = arith.constant 0 : index
    %13 = vector.load %arg7[%c0_13, %c0_14, %c0_15] : memref<1x16x1xf32, #tpu.memory_space<vmem>>, vector<1x16x1xf32>
    %14 = vector.shape_cast %13 : vector<1x16x1xf32> to vector<16x1xf32>
    %c0_16 = arith.constant 0 : index
    %c0_17 = arith.constant 0 : index
    %15 = vector.load %arg8[%c0_16, %c0_17] : memref<4x3xf32, #tpu.memory_space<vmem>>, vector<4x1xf32>
    %c0_18 = arith.constant 0 : index
    %c1 = arith.constant 1 : index
    %16 = vector.load %arg8[%c0_18, %c1] : memref<4x3xf32, #tpu.memory_space<vmem>>, vector<4x1xf32>
    %c0_19 = arith.constant 0 : index
    %c2 = arith.constant 2 : index
    %17 = vector.load %arg8[%c0_19, %c2] : memref<4x3xf32, #tpu.memory_space<vmem>>, vector<4x1xf32>
    %c0_20 = arith.constant 0 : index
    %c0_21 = arith.constant 0 : index
    %18 = vector.load %arg11[%c0_20, %c0_21] : memref<2x4xf32, #tpu.memory_space<vmem>>, vector<2x4xf32>
    %19 = tpu.iota {dimensions = array<i32: 0>} : vector<25x128xi32>
    %20 = tpu.iota {dimensions = array<i32: 0>} : vector<25x128xi32>
    %cst = arith.constant dense<0.000000e+00> : vector<4x128xf32>
    %21 = tpu.matmul %8, %6, %cst {dimension_numbers = #tpu.dot_dimension_numbers<[1], [0], [0], [1], [0, 0, 1, 1], [], []>} : vector<4x16xf32>, vector<16x128xf32>, vector<4x128xf32> -> vector<4x128xf32>
    %22 = vector.broadcast %10 : vector<4x1xf32> to vector<4x128xf32>
    %23 = arith.addf %21, %22 : vector<4x128xf32>
    %cst_22 = arith.constant 0.000000e+00 : f32
    %24 = vector.broadcast %cst_22 : f32 to vector<4x128xf32>
    %c0_23 = arith.constant 0 : index
    %c0_24 = arith.constant 0 : index
    %25 = vector.load %arg9[%c0_23, %c0_24] : memref<4x2xf32, #tpu.memory_space<vmem>>, vector<4x1xf32>
    %c0_25 = arith.constant 0 : index
    %c0_26 = arith.constant 0 : index
    %26 = vector.load %arg10[%c0_25, %c0_26] : memref<4x2xf32, #tpu.memory_space<vmem>>, vector<4x1xf32>
    %27 = vector.broadcast %25 : vector<4x1xf32> to vector<4x128xf32>
    %28 = arith.mulf %23, %27 : vector<4x128xf32>
    %29 = vector.broadcast %17 : vector<4x1xf32> to vector<4x128xf32>
    %30 = arith.addf %28, %29 : vector<4x128xf32>
    %31 = math.tanh %30 : vector<4x128xf32>
    %32 = vector.broadcast %15 : vector<4x1xf32> to vector<4x128xf32>
    %33 = arith.mulf %31, %32 : vector<4x128xf32>
    %34 = vector.broadcast %16 : vector<4x1xf32> to vector<4x128xf32>
    %35 = arith.subf %33, %34 : vector<4x128xf32>
    %36 = math.roundeven %35 : vector<4x128xf32>
    %37 = vector.broadcast %26 : vector<4x1xf32> to vector<4x128xf32>
    %38 = arith.mulf %36, %37 : vector<4x128xf32>
    %39 = arith.subf %23, %38 : vector<4x128xf32>
    %40 = arith.addf %24, %38 : vector<4x128xf32>
    %cst_27 = arith.constant dense<0.000000e+00> : vector<2x128xf32>
    %41 = tpu.matmul %18, %36, %cst_27 {dimension_numbers = #tpu.dot_dimension_numbers<[1], [0], [0], [1], [0, 0, 1, 1], [], []>} : vector<2x4xf32>, vector<4x128xf32>, vector<2x128xf32> -> vector<2x128xf32>
    %42 = vector.extract_strided_slice %41 {offsets = [0, 0], sizes = [1, 128], strides = [1, 1]} : vector<2x128xf32> to vector<1x128xf32>
    %cst_28 = arith.constant 1.200000e+01 : f32
    %43 = vector.broadcast %cst_28 : f32 to vector<1x128xf32>
    %44 = arith.addf %42, %43 : vector<1x128xf32>
    %45 = math.roundeven %44 : vector<1x128xf32>
    %46 = arith.fptosi %45 : vector<1x128xf32> to vector<1x128xi32>
    %47 = vector.extract_strided_slice %41 {offsets = [1, 0], sizes = [1, 128], strides = [1, 1]} : vector<2x128xf32> to vector<1x128xf32>
    %cst_29 = arith.constant 1.200000e+01 : f32
    %48 = vector.broadcast %cst_29 : f32 to vector<1x128xf32>
    %49 = arith.addf %47, %48 : vector<1x128xf32>
    %50 = math.roundeven %49 : vector<1x128xf32>
    %51 = arith.fptosi %50 : vector<1x128xf32> to vector<1x128xi32>
    %c25_i32 = arith.constant 25 : i32
    %52 = vector.broadcast %c25_i32 : i32 to vector<1x128xi32>
    %53 = arith.muli %52, %51 : vector<1x128xi32>
    %54 = arith.addi %46, %53 : vector<1x128xi32>
    %55 = vector.broadcast %46 : vector<1x128xi32> to vector<25x128xi32>
    %56 = arith.cmpi eq, %19, %55 : vector<25x128xi32>
    %57 = arith.extui %56 : vector<25x128xi1> to vector<25x128xi32>
    %58 = arith.sitofp %57 : vector<25x128xi32> to vector<25x128xf32>
    %59 = vector.broadcast %51 : vector<1x128xi32> to vector<25x128xi32>
    %60 = arith.cmpi eq, %20, %59 : vector<25x128xi32>
    %61 = arith.extui %60 : vector<25x128xi1> to vector<25x128xi32>
    %62 = arith.sitofp %61 : vector<25x128xi32> to vector<25x128xf32>
    %cst_30 = arith.constant dense<0.000000e+00> : vector<25x25xf32>
    %63 = tpu.matmul %62, %58, %cst_30 {dimension_numbers = #tpu.dot_dimension_numbers<[1], [1], [0], [0], [0, 0, 1, 0], [], []>} : vector<25x128xf32>, vector<25x128xf32>, vector<25x25xf32> -> vector<25x25xf32>
    %c0_31 = arith.constant 0 : index
    %c1_32 = arith.constant 1 : index
    %64 = vector.load %arg9[%c0_31, %c1_32] : memref<4x2xf32, #tpu.memory_space<vmem>>, vector<4x1xf32>
    %c0_33 = arith.constant 0 : index
    %c1_34 = arith.constant 1 : index
    %65 = vector.load %arg10[%c0_33, %c1_34] : memref<4x2xf32, #tpu.memory_space<vmem>>, vector<4x1xf32>
    %66 = vector.broadcast %64 : vector<4x1xf32> to vector<4x128xf32>
    %67 = arith.mulf %39, %66 : vector<4x128xf32>
    %68 = vector.broadcast %17 : vector<4x1xf32> to vector<4x128xf32>
    %69 = arith.addf %67, %68 : vector<4x128xf32>
    %70 = math.tanh %69 : vector<4x128xf32>
    %71 = vector.broadcast %15 : vector<4x1xf32> to vector<4x128xf32>
    %72 = arith.mulf %70, %71 : vector<4x128xf32>
    %73 = vector.broadcast %16 : vector<4x1xf32> to vector<4x128xf32>
    %74 = arith.subf %72, %73 : vector<4x128xf32>
    %75 = math.roundeven %74 : vector<4x128xf32>
    %76 = vector.broadcast %65 : vector<4x1xf32> to vector<4x128xf32>
    %77 = arith.mulf %75, %76 : vector<4x128xf32>
    %78 = arith.addf %40, %77 : vector<4x128xf32>
    %cst_35 = arith.constant dense<0.000000e+00> : vector<2x128xf32>
    %79 = tpu.matmul %18, %75, %cst_35 {dimension_numbers = #tpu.dot_dimension_numbers<[1], [0], [0], [1], [0, 0, 1, 1], [], []>} : vector<2x4xf32>, vector<4x128xf32>, vector<2x128xf32> -> vector<2x128xf32>
    %80 = vector.extract_strided_slice %79 {offsets = [0, 0], sizes = [1, 128], strides = [1, 1]} : vector<2x128xf32> to vector<1x128xf32>
    %cst_36 = arith.constant 1.200000e+01 : f32
    %81 = vector.broadcast %cst_36 : f32 to vector<1x128xf32>
    %82 = arith.addf %80, %81 : vector<1x128xf32>
    %83 = math.roundeven %82 : vector<1x128xf32>
    %84 = arith.fptosi %83 : vector<1x128xf32> to vector<1x128xi32>
    %85 = vector.extract_strided_slice %79 {offsets = [1, 0], sizes = [1, 128], strides = [1, 1]} : vector<2x128xf32> to vector<1x128xf32>
    %cst_37 = arith.constant 1.200000e+01 : f32
    %86 = vector.broadcast %cst_37 : f32 to vector<1x128xf32>
    %87 = arith.addf %85, %86 : vector<1x128xf32>
    %88 = math.roundeven %87 : vector<1x128xf32>
    %89 = arith.fptosi %88 : vector<1x128xf32> to vector<1x128xi32>
    %c25_i32_38 = arith.constant 25 : i32
    %90 = vector.broadcast %c25_i32_38 : i32 to vector<1x128xi32>
    %91 = arith.muli %90, %89 : vector<1x128xi32>
    %92 = arith.addi %84, %91 : vector<1x128xi32>
    %93 = vector.broadcast %84 : vector<1x128xi32> to vector<25x128xi32>
    %94 = arith.cmpi eq, %19, %93 : vector<25x128xi32>
    %95 = arith.extui %94 : vector<25x128xi1> to vector<25x128xi32>
    %96 = arith.sitofp %95 : vector<25x128xi32> to vector<25x128xf32>
    %97 = vector.broadcast %89 : vector<1x128xi32> to vector<25x128xi32>
    %98 = arith.cmpi eq, %20, %97 : vector<25x128xi32>
    %99 = arith.extui %98 : vector<25x128xi1> to vector<25x128xi32>
    %100 = arith.sitofp %99 : vector<25x128xi32> to vector<25x128xf32>
    %cst_39 = arith.constant dense<0.000000e+00> : vector<25x25xf32>
    %101 = tpu.matmul %100, %96, %cst_39 {dimension_numbers = #tpu.dot_dimension_numbers<[1], [1], [0], [0], [0, 0, 1, 0], [], []>} : vector<25x128xf32>, vector<25x128xf32>, vector<25x25xf32> -> vector<25x25xf32>
    %cst_40 = arith.constant dense<0.000000e+00> : vector<16x128xf32>
    %102 = tpu.matmul %12, %78, %cst_40 {dimension_numbers = #tpu.dot_dimension_numbers<[1], [0], [0], [1], [0, 0, 1, 1], [], []>} : vector<16x4xf32>, vector<4x128xf32>, vector<16x128xf32> -> vector<16x128xf32>
    %103 = vector.broadcast %14 : vector<16x1xf32> to vector<16x128xf32>
    %104 = arith.addf %102, %103 : vector<16x128xf32>
    %c0_41 = arith.constant 0 : index
    %c0_42 = arith.constant 0 : index
    %c0_43 = arith.constant 0 : index
    %105 = vector.load %arg12[%c0_41, %c0_42, %c0_43] : memref<1x16x128xf32, #tpu.memory_space<vmem>>, vector<1x16x128xf32>
    %106 = vector.shape_cast %105 : vector<1x16x128xf32> to vector<16x128xf32>
    %107 = vector.shape_cast %104 : vector<16x128xf32> to vector<1x16x128xf32>
    tpu.vector_store %arg12[%c0_41, %c0_42, %c0_43], %107 {strides = array<i32>} : memref<1x16x128xf32, #tpu.memory_space<vmem>>, vector<1x16x128xf32>,
    %108 = tpu.concatenate %54, %92 in 0 : vector<1x128xi32>, vector<1x128xi32> -> vector<2x128xi32>
    %c0_44 = arith.constant 0 : index
    %c0_45 = arith.constant 0 : index
    %c0_46 = arith.constant 0 : index
    %c0_47 = arith.constant 0 : index
    %109 = vector.load %arg13[%c0_44, %c0_45, %c0_46, %c0_47] : memref<1x1x2x128xi32, #tpu.memory_space<vmem>>, vector<1x1x2x128xi32>
    %110 = vector.shape_cast %109 : vector<1x1x2x128xi32> to vector<2x128xi32>
    %111 = vector.shape_cast %108 : vector<2x128xi32> to vector<1x1x2x128xi32>
    tpu.vector_store %arg13[%c0_44, %c0_45, %c0_46, %c0_47], %111 {strides = array<i32>} : memref<1x1x2x128xi32, #tpu.memory_space<vmem>>, vector<1x1x2x128xi32>,
    %c0_48 = arith.constant 0 : index
    %c0_49 = arith.constant 0 : index
    %c0_50 = arith.constant 0 : index
    %c0_51 = arith.constant 0 : index
    %112 = vector.load %arg14[%c0_48, %c0_49, %c0_50, %c0_51] : memref<1x2x25x25xf32, #tpu.memory_space<vmem>>, vector<1x1x25x25xf32>
    %113 = vector.shape_cast %112 : vector<1x1x25x25xf32> to vector<25x25xf32>
    %114 = arith.addf %113, %63 : vector<25x25xf32>
    %c0_52 = arith.constant 0 : index
    %c0_53 = arith.constant 0 : index
    %c0_54 = arith.constant 0 : index
    %c0_55 = arith.constant 0 : index
    %115 = vector.load %arg14[%c0_52, %c0_53, %c0_54, %c0_55] : memref<1x2x25x25xf32, #tpu.memory_space<vmem>>, vector<1x1x25x25xf32>
    %116 = vector.shape_cast %115 : vector<1x1x25x25xf32> to vector<25x25xf32>
    %117 = vector.shape_cast %114 : vector<25x25xf32> to vector<1x1x25x25xf32>
    tpu.vector_store %arg14[%c0_52, %c0_53, %c0_54, %c0_55], %117 {strides = array<i32>} : memref<1x2x25x25xf32, #tpu.memory_space<vmem>>, vector<1x1x25x25xf32>,
    %c0_56 = arith.constant 0 : index
    %c1_57 = arith.constant 1 : index
    %c0_58 = arith.constant 0 : index
    %c0_59 = arith.constant 0 : index
    %118 = vector.load %arg14[%c0_56, %c1_57, %c0_58, %c0_59] : memref<1x2x25x25xf32, #tpu.memory_space<vmem>>, vector<1x1x25x25xf32>
    %119 = vector.shape_cast %118 : vector<1x1x25x25xf32> to vector<25x25xf32>
    %120 = arith.addf %119, %101 : vector<25x25xf32>
    %c0_60 = arith.constant 0 : index
    %c1_61 = arith.constant 1 : index
    %c0_62 = arith.constant 0 : index
    %c0_63 = arith.constant 0 : index
    %121 = vector.load %arg14[%c0_60, %c1_61, %c0_62, %c0_63] : memref<1x2x25x25xf32, #tpu.memory_space<vmem>>, vector<1x1x25x25xf32>
    %122 = vector.shape_cast %121 : vector<1x1x25x25xf32> to vector<25x25xf32>
    %123 = vector.shape_cast %120 : vector<25x25xf32> to vector<1x1x25x25xf32>
    tpu.vector_store %arg14[%c0_60, %c1_61, %c0_62, %c0_63], %123 {strides = array<i32>} : memref<1x2x25x25xf32, #tpu.memory_space<vmem>>, vector<1x1x25x25xf32>,
    return
  }
  func.func @transform_0(%arg0: i32, %arg1: i32, %arg2: i32) -> (i32, i32, i32) {
    %c0_i32 = arith.constant 0 : i32
    return %arg1, %arg0, %arg2 : i32, i32, i32
  }
  func.func @transform_1(%arg0: i32, %arg1: i32, %arg2: i32) -> (i32, i32, i32) {
    %c0_i32 = arith.constant 0 : i32
    %c0_i32_0 = arith.constant 0 : i32
    %c0_i32_1 = arith.constant 0 : i32
    return %arg0, %c0_i32, %c0_i32_0 : i32, i32, i32
  }
  func.func @transform_2(%arg0: i32, %arg1: i32, %arg2: i32) -> (i32, i32, i32) {
    %c0_i32 = arith.constant 0 : i32
    %c0_i32_0 = arith.constant 0 : i32
    %c0_i32_1 = arith.constant 0 : i32
    return %arg0, %c0_i32, %c0_i32_0 : i32, i32, i32
  }
  func.func @transform_3(%arg0: i32, %arg1: i32, %arg2: i32) -> (i32, i32, i32) {
    %c0_i32 = arith.constant 0 : i32
    %c0_i32_0 = arith.constant 0 : i32
    %c0_i32_1 = arith.constant 0 : i32
    return %arg0, %c0_i32, %c0_i32_0 : i32, i32, i32
  }
  func.func @transform_4(%arg0: i32, %arg1: i32, %arg2: i32) -> (i32, i32, i32) {
    %c0_i32 = arith.constant 0 : i32
    %c0_i32_0 = arith.constant 0 : i32
    %c0_i32_1 = arith.constant 0 : i32
    return %arg0, %c0_i32, %c0_i32_0 : i32, i32, i32
  }
  func.func @transform_5(%arg0: i32, %arg1: i32, %arg2: i32) -> (i32, i32) {
    %c0_i32 = arith.constant 0 : i32
    %c0_i32_0 = arith.constant 0 : i32
    %c0_i32_1 = arith.constant 0 : i32
    return %c0_i32, %c0_i32_0 : i32, i32
  }
  func.func @transform_6(%arg0: i32, %arg1: i32, %arg2: i32) -> (i32, i32) {
    %c0_i32 = arith.constant 0 : i32
    %c0_i32_0 = arith.constant 0 : i32
    %c0_i32_1 = arith.constant 0 : i32
    return %c0_i32, %c0_i32_0 : i32, i32
  }
  func.func @transform_7(%arg0: i32, %arg1: i32, %arg2: i32) -> (i32, i32) {
    %c0_i32 = arith.constant 0 : i32
    %c0_i32_0 = arith.constant 0 : i32
    %c0_i32_1 = arith.constant 0 : i32
    return %c0_i32, %c0_i32_0 : i32, i32
  }
  func.func @transform_8(%arg0: i32, %arg1: i32, %arg2: i32) -> (i32, i32) {
    %c0_i32 = arith.constant 0 : i32
    %c0_i32_0 = arith.constant 0 : i32
    %c0_i32_1 = arith.constant 0 : i32
    return %c0_i32, %c0_i32_0 : i32, i32
  }
  func.func @transform_9(%arg0: i32, %arg1: i32, %arg2: i32) -> (i32, i32, i32) {
    %c0_i32 = arith.constant 0 : i32
    return %arg1, %arg0, %arg2 : i32, i32, i32
  }
  func.func @transform_10(%arg0: i32, %arg1: i32, %arg2: i32) -> (i32, i32, i32, i32) {
    %c0_i32 = arith.constant 0 : i32
    %c0_i32_0 = arith.constant 0 : i32
    return %arg0, %arg1, %c0_i32, %arg2 : i32, i32, i32, i32
  }
  func.func @transform_11(%arg0: i32, %arg1: i32, %arg2: i32) -> (i32, i32, i32, i32) {
    %c0_i32 = arith.constant 0 : i32
    %c0_i32_0 = arith.constant 0 : i32
    %c0_i32_1 = arith.constant 0 : i32
    %c0_i32_2 = arith.constant 0 : i32
    return %arg0, %c0_i32, %c0_i32_0, %c0_i32_1 : i32, i32, i32, i32
  }
}

</mosaic_0001>

<bundles_post_ra>
// kernel: _lambda_.1
= control target key start
LH: loop header
LB: loop body
LE: loop exit
PB: predicated region body
PF: predicated region fallthrough
CT: control target
= control target key end

     0   :  { %s2382_s0 = inlined_call_operand.hbm [shape: f32[2,32,256], index: 0, kind: input, shape index: {}]   ;;  %s2383_s1 = inlined_call_operand.vmem [shape: f32[2,4,16], index: 1, kind: input, shape index: {}]   ;;  %s2384_s2 = inlined_call_operand.vmem [shape: f32[2,4,1], index: 2, kind: input, shape index: {}]   ;;  %s2385_s3 = inlined_call_operand.vmem [shape: f32[2,16,4], index: 3, kind: input, shape index: {}]   ;;  %s2386_s4 = inlined_call_operand.vmem [shape: f32[2,16,1], index: 4, kind: input, shape index: {}]   ;;  %s2387_s5 = inlined_call_operand.vmem [shape: f32[4,3], index: 5, kind: input, shape index: {}]   ;;  %s2388_s6 = inlined_call_operand.vmem [shape: f32[4,2], index: 6, kind: input, shape index: {}]   ;;  %s2389_s7 = inlined_call_operand.vmem [shape: f32[4,2], index: 7, kind: input, shape index: {}]   ;;  %s2390_s8 = inlined_call_operand.vmem [shape: f32[2,4], index: 8, kind: input, shape index: {}]   ;;  %s2391_s9 = inlined_call_operand.hbm [shape: f32[2,32,256], index: 9, kind: output, shape index: {0}]   ;;  %s2392_s10 = inlined_call_operand.vmem [shape: s32[2,2,2,256], index: 10, kind: output, shape index: {1}]   ;;  %s2393_s11 = inlined_call_operand.vmem [shape: f32[2,2,25,25], index: 11, kind: output, shape index: {2}]  }
   0x1   :  { %2408 = sst [smem:[#allocation20_spill]] %s2382_s0 }
   0x2   :  { %2409 = sst [smem:[#allocation21_spill]] %s2383_s1 }
   0x3   :  { %2410 = sst [smem:[#allocation22_spill]] %s2384_s2 }
   0x4   :  { %2411 = sst [smem:[#allocation23_spill]] %s2385_s3 }
   0x5   :  { %2412 = sst [smem:[#allocation24_spill]] %s2386_s4 }
   0x6   :  { %2413 = sst [smem:[#allocation25_spill]] %s2387_s5 }
   0x7   :  { %2414 = sst [smem:[#allocation26_spill]] %s2388_s6 }
   0x8   :  { %2415 = sst [smem:[#allocation27_spill]] %s2389_s7 }
   0x9   :  { %2416 = sst [smem:[#allocation28_spill]] %s2390_s8 }
   0xa   :  { %2417 = sst [smem:[#allocation29_spill]] %s2391_s9 }
   0xb   :  { %2418 = sst [smem:[#allocation30_spill]] %s2392_s10 }
   0xc   :  { %2419 = sst [smem:[#allocation31_spill]] %s2393_s11 }
   0xd   :  { %17 = vsyncpa [#allocation3], 0 }
   0xe   :  { %19 = vsyncpa [#allocation3 + $0x1], 0 }
   0xf   :  { %20 = vsyncpa [#allocation4], 0 }
  0x10   :  { %22 = vsyncpa [#allocation4 + $0x1], 0  ;;  %s2026_s17 = smov 0   ;;  %s2028_s18 = smov 0  }
  0x11   :  { %s2030_s19 = smov 0   ;;  %s2032_s20 = smov 0  }
  0x12   :  { %s2034_s21 = smov 0   ;;  %s2036_s22 = smov 0  }
  0x13   :  { %s2038_s23 = smov 0   ;;  %s2040_s24 = smov 0  }
  0x14   :  { %s2042_s25 = smov 0   ;;  %s2044_s26 = smov 0  }
  0x15 LB: > { %2420 = sst [smem:[#allocation8_spill]] %s1911_s17  ;;  %s1497_s27 = sadd.s32 4294967295, %s1947_s26   ;;  %s1947_s26 = sphi %s2044_s26, %s28_s26   ;;  %s1943_s25 = sphi %s2042_s25, %s2466_s25   ;;  %s1939_s24 = sphi %s2040_s24, %s2465_s24   ;;  %s1935_s23 = sphi %s2038_s23, %s2464_s23   ;;  %s1931_s22 = sphi %s2036_s22, %s2463_s22   ;;  %s1927_s21 = sphi %s2034_s21, %s2462_s21   ;;  %s1923_s20 = sphi %s2032_s20, %s2461_s20   ;;  %s1919_s19 = sphi %s2030_s19, %s2460_s19   ;;  %s1915_s18 = sphi %s2028_s18, %s2459_s18   ;;  %s1911_s17 = sphi %s2026_s17, %s2458_s17  }
  0x16   : > { %2421 = sst [smem:[#allocation9_spill]] %s1915_s18  ;;  %s1498_s28 = sadd.s32 4294967294, %s1947_s26  }
  0x17   : > { %2422 = sst [smem:[#allocation10_spill]] %s1919_s19  ;;  %s40_s29 = sadd.s32 1, %s1935_s23 }
  0x18   : > { %2423 = sst [smem:[#allocation11_spill]] %s1935_s23  ;;  %s43_s30 = sadd.s32 1, %s1939_s24 }
  0x19   : > { %2424 = sst [smem:[#allocation12_spill]] %s1939_s24  ;;  %p41_p0 = scmp.ge.s32.totalorder %s40_s29, 2 }
  0x1a   : > { %2425 = sst [smem:[#allocation13_spill]] %s1943_s25  ;;  %s47_s12 = sadd.s32 1, %s1943_s25 }
  0x1b   : > { %s58_s13 = sadd.s32 1, %s1919_s19  ;;  %p65_p1 = scmp.ne.s32.totalorder %s1919_s19, %s1915_s18 }
  0x1c   : > { %s2468_s29 = smov (%p41_p0, %s40_s29), 0  ;;  %s2470_s30 = smov (!%p41_p0, %s43_s30), %s1939_s24 }
  0x1d   : > { %2426 = sst [smem:[#allocation14_spill]] %s2468_s29  ;;  %s54_s14 = ssub.s32 %s1935_s23, %s2468_s29 }
  0x1e   : > { %p66_p2 = scmp.eq.s32.totalorder %s1947_s26, 0  ;;  %p45_p3 = scmp.ge.s32.totalorder %s2470_s30, 2 }
  0x1f   : > { %p71_p4 = scmp.ne.s32.totalorder %s1915_s18, %s1911_s17  ;;  %p72_p6 = scmp.eq.s32.totalorder %s1497_s27, 0 }
  0x20   : > { %p2095_p5 = por %p66_p2, %p65_p1  ;;  %s2472_s30 = smov (%p45_p3, %s2470_s30), 0 }
  0x21   : > { %2428 = sst [smem:[#allocation15_spill]] %s2472_s30  ;;  %s2474_s12 = smov (!%p45_p3, %s47_s12), %s1943_s25 }
  0x22   : > { %s51_s16 = ssub.s32 %s1939_s24, %s2472_s30  ;;  %p2104_p7 = por %p72_p6, %p71_p4 }
  0x23   : > { %p49_p8 = scmp.ge.s32.totalorder %s2474_s12, 2  ;;  %p287_p9 = scmp.eq.s32.totalorder %s1497_s27, 7 }
  0x24   : > { %p293_p10 = scmp.eq.s32.totalorder %s1498_s28, 7  ;;  %p1695_p13 = scmp.lt.s32.totalorder %s1947_s26, 8 }
  0x25   : > { %s2476_s12 = smov (%p49_p8, %s2474_s12), 0  ;;  %p2113_p11 = por %p287_p9, %p65_p1 }
  0x26   : > { %2430 = sst [smem:[#allocation16_spill]] %s2476_s12  ;;  %p2117_p12 = por %p293_p10, %p71_p4 }
  0x27   : > { %s2431_s17 = scalar_select %p2113_p11, 1, 0 }
  0x28   : > { %s2433_s30 = scalar_select %p2117_p12, 1, 0 }
  0x29   : > { %2432 = sst [smem:[#allocation17_spill]] %s2431_s17  ;;  %s52_s9 = ssub.s32 %s1943_s25, %s2476_s12 }
  0x2a   : > { %2434 = sst [smem:[#allocation18_spill]] %s2433_s30  ;;  %s53_s8 = sor.u32 %s52_s9, %s51_s16 }
  0x2b   : > { %s381_s7 = sand.u32 1, %s1919_s19   ;;  %s55_s27 = sor.u32 %s54_s14, %s53_s8 }
  0x2c   : > { %p56_p0 = scmp.eq.s32.totalorder %s55_s27, 0  ;;  %s1501_s28 = sshll.u32 %s381_s7, 4 }
  0x2d   : > { %s1575_s6 = sshll.u32 %s1943_s25, 2  ;;  %s1504_s11 = sshll.u32 %s1939_s24, 3 }
  0x2e   : > { %s2127_s5 = scalar_select %p56_p0, %s1919_s19, %s58_s13  }
  0x2f   : > { %s391_s10 = sadd.s32 %s1935_s23, %s1575_s6  ;;  %s385_s17 = scalar_lea.vmem [#allocation2], %s1501_s28 }
  0x30   : > { %2435 = sst [smem:[#allocation19_spill]] %s2127_s5  ;;  %s393_s4 = sadd.s32 %s1504_s11, %s391_s10 }
  0x31   : > { %s396_s3 = sshll.u32 %s385_s17, 4  ;;  %s1505_s2 = sshll.u32 %s393_s4, 7  ;;  %s2131_s3 = int_to_ptr.vmem [resolvable:$true] %s396_s3 }
  0x32   : > { %s2436_s0 = sld [smem:[#allocation20_spill]]  ;;  %p2142_p1 = pnand %p1695_p13, %p2095_p5 }
  0x33   : > { %s2146_s4 = scalar_lea.sflag [#allocation3], %s381_s7 }
  0x34   : > { %p1805_p3 = pneg %p2142_p1 }
  0x38   : > { %s2136_s1 = scalar_lea.hbm %s2436_s0, %s1505_s2  ;;  %s1808_s10 = scalar_lea.hbm %s2436_s0, 2048 }
  0x39   : > { %s1803_s8 = scalar_lea.hbm %s2136_s1, 256  ;;  %p1809_p5 = scmp.lt.u32.totalorder %s2136_s1, %s2436_s0 }
  0x3a   : > { %p1804_p2 = scmp.ne.s32.totalorder %s2136_s1, %s1803_s8  ;;  %p1810_p8 = scmp.lt.u32.totalorder %s1808_s10, %s1803_s8 }
  0x3b   : > { %p1812_p10 = scmp.lt.u32.totalorder %s1803_s8, %s2136_s1 }
  0x3c   : > { %p1806_p4 = pnand %p1805_p3, %p1804_p2  ;;  %p1811_p9 = por %p1810_p8, %p1809_p5 }
  0x3e   : > { %p1807_p6 = pneg %p1806_p4  ;;  %p1813_p13 = por %p1812_p10, %p1811_p9 }
  0x40   : > { %p1814_p0 = pnand %p1813_p13, %p1807_p6 }
  0x42   : > { %1817 = shalt.err (!%p1814_p0)
}
  0x43   : > { %s1818_s7 = scalar_lea.vmem %s2131_s3, 256  ;;  %s1949_s30 = smov [#allocation2]  }
  0x44   : > { %p1819_p2 = scmp.ne.s32.totalorder %s2131_s3, %s1818_s7  ;;  %s1823_s12 = sshll.u32 %s1949_s30, 4  ;;  %s1824_s12 = int_to_ptr.vmem [resolvable:$false] %s1823_s12 }
  0x45   : > { %s1825_s13 = scalar_lea.vmem %s1824_s12, 512  ;;  %p1826_p11 = scmp.lt.s32.totalorder %s2131_s3, %s1824_s12 }
  0x46   : > { %p1821_p4 = pnand %p1819_p2, %p1805_p3  ;;  %p1827_p5 = scmp.lt.s32.totalorder %s1825_s13, %s1818_s7 }
  0x48   : > { %p1822_p12 = pneg %p1821_p4  ;;  %p1828_p8 = por %p1827_p5, %p1826_p11 }
  0x4a   : > { %p1829_p9 = pnand %p1828_p8, %p1822_p12 }
  0x4c   : > { %1832 = shalt.err (!%p1829_p9)
}
  0x4d   : > { %s1950_s14 = smov 256   ;;  %s1951_s15 = smov 128  }
  0x4e   : > { %s1952_s16 = smov 8   ;;  %p1506_p3 = scmp.ge.s32.totalorder %s1947_s26, 1 }
  0x4f   : > { %1690 = dma.hbm_to_vmem [thread:$0]  (!%p2142_p1), %s2136_s1, 256, %s2131_s3, %s2146_s4, %s1950_s14, %s1951_s15, %s1952_s16  }
  0x50   : > { %p434_p6 = scmp.lt.s32.totalorder %s1947_s26, 9 }
  0x52   : > { %p435_p10 = pnand %p1506_p3, %p434_p6 }
  0x53   : > { %s2177_s27 = sand.u32 (!%p435_p10), 1, %s1915_s18  }
  0x54   : > { %438 = sbr.rel (%p435_p10) target bundleno = 841 (0x349), region = 56  ;;  %s1507_s28 = sshll.u32 (!%p435_p10), %s2177_s27, 4 }
  0x55   : > { %s441_s8 = scalar_lea.sflag (!%p435_p10), [#allocation3], %s2177_s27  ;;  %s2181_s2 = scalar_lea.vmem (!%p435_p10), [#allocation2], %s1507_s28 }
  0x5b   : > { %1902 = dma.done.wait (%p2104_p7), %s441_s8, 256  }
  0x5c   : > { %1904 = vsyncadd (%p2104_p7), %s441_s8, 4294967040  ;;  %p519_p11 = scmp.lt.s32.totalorder %s1931_s22, 1  ;;  %p540_p12 = scmp.lt.s32.totalorder %s1927_s21, 1 }
  0x5d   : > { %p542_p1 = scmp.lt.s32.totalorder %s1923_s20, 1  ;;  %s2439_s30 = sld [smem:[#allocation22_spill]] }
  0x5e   : > { %s520_s1 = scalar_select %p519_p11, %s1931_s22, 1 }
  0x5f   : > { %s541_s3 = scalar_select %p540_p12, %s1927_s21, 1 }
  0x60   : > { %s2192_s6 = sshll.u32 %s520_s1, 2  ;;  %s1576_s29 = sshll.u32 %s520_s1, 4 }
  0x61   : > { %s2440_s15 = sld [smem:[#allocation23_spill]]  ;;  %s2441_s25 = sld [smem:[#allocation24_spill]] }
  0x62   : > { %s543_s23 = scalar_select %p542_p1, %s1923_s20, 1 }
  0x63   : > { %s526_s12 = scalar_lea.vmem %s2439_s30, %s2192_s6  ;;  %s1515_s5 = sshll.u32 %s541_s3, 1 }
  0x64   : > { %s1578_s19 = sshll.u32 %s520_s1, 6  ;;  %s545_s18 = sadd.s32 %s1515_s5, %s543_s23 }
  0x65   : > { %s2442_s10 = sld [smem:[#allocation31_spill]]  ;;  %s547_s17 = sadd.s32 %s2192_s6, %s545_s18 }
  0x66   : > { %p555_p7 = scmp.eq.s32.totalorder %s1927_s21, 0  ;;  %s2220_s7 = sshll.u32 %s547_s17, 1 }
  0x67   : > { %s2205_s16 = scalar_lea.vmem %s2440_s15, %s1576_s29  ;;  %s2210_s24 = scalar_lea.vmem %s2441_s25, %s1576_s29 }
  0x68   : > { %p556_p13 = scmp.eq.s32.totalorder %s1923_s20, 0  ;;  %s2443_s0 = sld [smem:[#allocation30_spill]] }
  0x69   : > { %s2227_s29 = scalar_lea.vmem [#allocation5], %s1507_s28 }
  0x6a   : > { %p557_p0 = pnand %p556_p13, %p555_p7 }
  0x6b   : > { %s2216_s11 = scalar_lea.vmem %s2442_s10, %s1578_s19  ;;  %vm561_vm0 = vcmask (!%p557_p0), 203776   ;;  %vm565_vm1 = vcmask (!%p557_p0), 196608   ;;  %v1953_v0 = vmov (!%p557_p0), 0.0  }
  0x6c   : > { %560 = sbr.rel (%p557_p0) target bundleno = 115 (0x73), region = 64  ;;  %562 = vst.msk [vmem:[%s2216_s11] sm:$0xff] (!%p557_p0), %vm561_vm0, %v1953_v0  ;;  %563 = vst.msk [vmem:[%s2216_s11 + $0x8] sm:$0xff] (!%p557_p0), %vm561_vm0, %v1953_v0 }
  0x6d   : > { %564 = vst.msk [vmem:[%s2216_s11 + $0x10] sm:$0xff] (!%p557_p0), %vm561_vm0, %v1953_v0  ;;  %567 = vst.msk [vmem:[%s2216_s11 + $0x20] sm:$0xff] (!%p557_p0), %vm561_vm0, %v1953_v0 }
  0x6e   : > { %s549_s25 = scalar_lea.vmem %s2443_s0, %s2220_s7  ;;  %568 = vst.msk [vmem:[%s2216_s11 + $0x28] sm:$0xff] (!%p557_p0), %vm561_vm0, %v1953_v0  ;;  %569 = vst.msk [vmem:[%s2216_s11 + $0x30] sm:$0xff] (!%p557_p0), %vm561_vm0, %v1953_v0 }
  0x6f   : > { %566 = vst.msk [vmem:[%s2216_s11 + $0x18] sm:$0x1] (!%p557_p0), %vm565_vm1, %v1953_v0  ;;  %570 = vst.msk [vmem:[%s2216_s11 + $0x38] sm:$0x1] (!%p557_p0), %vm565_vm1, %v1953_v0 }
  0x73 PF: > { %v571_v1 = vld [vmem:[%s2181_s2] sm:$0xff]  ;;  %v572_v2 = vld [vmem:[%s2181_s2 + $0x8] sm:$0xff]  ;;  %v1954_v3 = vmov 0.0|0.0   ;;  %vm1955_vm2 = vmmov 0   ;;  %v1956_v5 = vmov 0.0   ;;  %v1957_v7 = vmov 0  }
  0x74   : > { %1656 = vmatprep.subr.bf16.mxu0 %v1954_v3  ;;  %v1657_v4 = vpack.c.bf16 %v572_v2, %v571_v1  ;;  %1610 = vmatprep.mubr.msk.f32.mxu0 %vm1955_vm2, %v1956_v5  ;;  %v574_v6 = vld [vmem:[%s526_s12] sm:$0xf]  ;;  %v1958_v8 = vmov 2   ;;  %s2445_s1 = sld [smem:[#allocation25_spill]]  ;;  %s2446_s14 = sld [smem:[#allocation21_spill]]  ;;  %vm591_vm3 = vcmask 130048   ;;  %v581_v44 = vlaneseq }
  0x75   : > { %1792 = vset.pattern.permute.xlu0 %v1957_v7  ;;  %1793 = vset.pattern.permute.xlu1 %v1958_v8  ;;  %s2448_s9 = sld [smem:[#allocation26_spill]]  ;;  %s2449_s10 = sld [smem:[#allocation27_spill]]  ;;  %v1959_v13 = vmov 1   ;;  %vm703_vm4 = vcmask 1043456   ;;  %vm699_vm5 = vcmask 31744   ;;  %v577_v42 = vld [vmem:[%s2210_s24] sm:$0xff] }
  0x76   : > { %1658 = vmatpush3.bf16.msra.mxu0 %v1657_v4  ;;  %588 = vperm.xlu0 %1792, %v574_v6   ;;  %s2450_s13 = sld [smem:[#allocation28_spill]]  ;;  %v578_v43 = vld [vmem:[%s2210_s24 + $0x8] sm:$0xff]  ;;  %v582_v45 = vshrl.u32 %v581_v44, 7  ;;  %v1960_v57 = vmov 1.0|1.0   ;;  %v1961_v58 = vmov 1.0  }
  0x77   : > { %1613 = vmatprep.subr.mxu1 %v1956_v5  ;;  %1615 = vmatprep.mubr.msk.f32.mxu1 %vm1955_vm2, %v1956_v5  ;;  %v575_v63 = vld [vmem:[%s2205_s16] sm:$0xff]  ;;  %s1579_s5 = sshll.u32 %s1931_s22, 2  ;;  %s1571_s7 = sshll.u32 %s1927_s21, 3 }
  0x78   : > { %1632 = vmatprep.subr.mxu0 %v1956_v5  ;;  %v784_v48 = vsub.s32 0, %v582_v45  ;;  %v800_v49 = vsub.s32 1, %v582_v45  ;;  %v583_v52 = vadd.s32 8, %v582_v45  ;;  %v584_v53 = vadd.s32 16, %v582_v45  ;;  %s1267_s18 = sadd.s32 %s1923_s20, %s1579_s5  ;;  %s2452_s21 = sld [smem:[#allocation17_spill]] }
  0x79   : > { %v2270_v54 = vadd.s32 24, %v582_v45  ;;  %s1272_s22 = sshll.u32 %s2227_s29, 4  ;;  %s2453_s28 = sld [smem:[#allocation29_spill]]  ;;  %s2308_s22 = int_to_ptr.vmem [resolvable:$true] %s1272_s22 }
  0x7a   : > { %v579_v9 = vld [vmem:[%s2445_s1] sm:$0xf]  ;;  %s2447_s15 = scalar_lea.vmem %s2446_s14, %s2192_s6  ;;  %s1238_s2 = scalar_lea.sflag [#allocation4], %s2177_s27 }
  0x7b   : > { %v573_v10 = vld [vmem:[%s2447_s15] sm:$0xf]  ;;  %675 = vperm.xlu1 %1793, %v579_v9   ;;  %s1833_s3 = scalar_lea.vmem %s2308_s22, 256  ;;  %s1962_s14 = smov [#allocation5]  }
  0x7c   : > { %v665_v11 = vld [vmem:[%s2448_s9] sm:$0xf]  ;;  %1611 = vmatmul.mubr.msk.f32.vlgmr.msra.gmra.mrb[0].mxu0 %vm591_vm3, %v573_v10  ;;  %p1834_p2 = scmp.ne.s32.totalorder %s2308_s22, %s1833_s3  ;;  %s1837_s15 = sshll.u32 %s1962_s14, 4  ;;  %s1838_s15 = int_to_ptr.vmem [resolvable:$false] %s1837_s15 }
  0x7d   : > { %669 = vperm.xlu0 %1792, %v665_v11   ;;  %1634 = vmatprep.mubr.msk.f32.mxu0 %vm1955_vm2, %v1956_v5  ;;  %v666_v12 = vld [vmem:[%s2449_s10] sm:$0xf]  ;;  %v576_v5 = vld [vmem:[%s2205_s16 + $0x8] sm:$0xff]  ;;  %s1839_s8 = scalar_lea.vmem %s1838_s15, 512  ;;  %p1840_p9 = scmp.lt.s32.totalorder %s2308_s22, %s1838_s15 }
  0x7e   : > { %v580_v29 = vld [vmem:[%s2450_s13] sm:$0x3]  ;;  %p2454_p4 = scmp.ne.s32.totalorder %s2452_s21, 0  ;;  %p1841_p3 = scmp.lt.s32.totalorder %s1839_s8, %s1833_s3 }
  0x7f   : > { %1794 = vset.pattern.permute.xlu1 %v1957_v7 }
  0x80   : > { %681 = vperm.xlu1 %1794, %v579_v9   ;;  %p1835_p5 = pnand %p1834_p2, %p2454_p4  ;;  %p1842_p6 = por %p1841_p3, %p1840_p9 }
  0x81   : > { %1795 = vset.pattern.permute.xlu0 %v1959_v13 }
  0x82   : > { %686 = vperm.xlu0 %1795, %v579_v9   ;;  %p1836_p8 = pneg %p1835_p5 }
  0x84   : > { %693 = vperm.xlu1 %1794, %v666_v12   ;;  %p1843_p10 = pnand %p1842_p6, %p1836_p8 }
  0x86   : > { %910 = vperm.xlu0 %1795, %v666_v12   ;;  %v1210_v12 = vld [vmem:[%s2216_s11] sm:$0xff] }
  0x88   : > { %1796 = vset.pattern.permute.xlu1 %v1959_v13 }
  0x89   : > { %900 = vperm.xlu1 %1796, %v665_v11   ;;  %v1211_v11 = vld [vmem:[%s2216_s11 + $0x8] sm:$0xff] }
  0x8a   : > { %1798 = vset.pattern.permute.xlu0 %v1957_v7 }
  0x8b   : > { %1117 = vperm.xlu0 %1798, %v578_v43  }
  0x8d   : > { %1797 = vset.pattern.permute.xlu1 %v1957_v7 }
  0x8e   : > { %1112 = vperm.xlu1 %1797, %v577_v42  }
  0xf5   : > { %v589_v14 = vpop.permute.xlu0 %588 }
  0xfa   : > { %v676_v19 = vpop.permute.xlu1 %675 }
  0xfc   : > { %v670_v18 = vpop.permute.xlu0 %669 }
  0xff   : > { %v682_v22 = vpop.permute.xlu1 %681 }
 0x101   : > { %v687_v25 = vpop.permute.xlu0 %686 }
 0x103   : > { %v694_v27 = vpop.permute.xlu1 %693 }
 0x105   : > { %v911_v39 = vpop.permute.xlu0 %910 }
 0x108   : > { %v901_v31 = vpop.permute.xlu1 %900 }
 0x14f   : > { %v661_v15 = vpop.f32.mrb[0].mxu0 }
 0x150   : > { %v662_v16 = vadd.f32 %v661_v15, %v589_v14  ;;  %v1612_v17 = vpop.f32.mrb[1].mxu0 }
 0x151   : > { %v1213_v17 = vld [vmem:[%s2216_s11 + $0x18] sm:$0x1] }
 0x152   : > { %v672_v20 = vmul.f32 %v670_v18, %v662_v16  ;;  %v1212_v18 = vld [vmem:[%s2216_s11 + $0x10] sm:$0xff] }
 0x154   : > { %v678_v21 = vadd.f32 %v676_v19, %v672_v20 }
 0x156   : > { %1799 = vtanh.f32 %v678_v21 }
 0x160   : > { %v1800_v23 = vpop.eup %1799 }
 0x161   : > { %v684_v24 = vmul.f32 %v1800_v23, %v682_v22  ;;  %v1118_v23 = vpop.permute.xlu0 %1117 }
 0x163   : > { %v689_v26 = vsub.f32 %v684_v24, %v687_v25  ;;  %v1113_v24 = vpop.permute.xlu1 %1112 }
 0x165   : > { %v1675_v28 = vround.rtne.f32 %v689_v26 }
 0x167   : > { %v696_v30 = vmul.f32 %v1675_v28, %v694_v27  ;;  %1614 = vmatpush3.msk.msra.mxu1 %vm703_vm4, %v1675_v28 }
 0x168   : > { %1616 = vmatmul.mubr.msk.f32.vlgmr.msra.gmra.mrb[0].mxu1 %vm699_vm5, %v580_v29 }
 0x169   : > { %v697_v32 = vsub.f32 %v662_v16, %v696_v30 }
 0x16b   : > { %v903_v33 = vmul.f32 %v901_v31, %v697_v32 }
 0x16d   : > { %v904_v34 = vadd.f32 %v903_v33, %v676_v19 }
 0x16f   : > { %1801 = vtanh.f32 %v904_v34 }
 0x179   : > { %v1802_v35 = vpop.eup %1801 }
 0x17a   : > { %v906_v36 = vmul.f32 %v1802_v35, %v682_v22 }
 0x17c   : > { %v907_v37 = vsub.f32 %v906_v36, %v687_v25 }
 0x17e   : > { %v1679_v38 = vround.rtne.f32 %v907_v37 }
 0x180   : > { %1633 = vmatpush3.msk.msra.mxu0 %vm703_vm4, %v1679_v38  ;;  %v913_v40 = vmul.f32 %v1679_v38, %v911_v39 }
 0x181   : > { %1635 = vmatmul.mubr.msk.f32.vlgmr.msra.gmra.mrb[2].mxu0 %vm699_vm5, %v580_v29 }
 0x182   : > { %v914_v41 = vadd.f32 %v913_v40, %v696_v30 }
 0x23b   : > { %v773_v46 = vpop.f32.mrb[0].mxu1 }
 0x23c   : > { %v777_v47 = vadd.f32 12.0, %v773_v46  ;;  %v1617_v50 = vpop.f32.mrb[1].mxu1 }
 0x23e   : > { %v1678_v51 = vcvt.f32.s32 %v777_v47 }
 0x240   : > { %v785_v55 = vrot.slane %v1678_v51, %v784_v48  ;;  %v801_v56 = vrot.slane %v1678_v51, %v800_v49  ;;  %v779_v62 = vmul.u32 25, %v1678_v51 }
 0x242   : > { %vm786_vm6 = vcmp.eq.s32.totalorder %v582_v45, %v785_v55  ;;  %vm787_vm7 = vcmp.eq.s32.totalorder %v583_v52, %v785_v55  ;;  %vm788_vm8 = vcmp.eq.s32.totalorder %v584_v53, %v785_v55  ;;  %vm789_vm10 = vcmp.eq.s32.totalorder %v2270_v54, %v785_v55 }
 0x243   : > { %vm1659_vm9 = vmpackc.low %vm787_vm7, %vm786_vm6  ;;  %vm802_vm11 = vcmp.eq.s32.totalorder %v582_v45, %v801_v56  ;;  %vm803_vm13 = vcmp.eq.s32.totalorder %v583_v52, %v801_v56  ;;  %vm804_vm14 = vcmp.eq.s32.totalorder %v584_v53, %v801_v56  ;;  %vm805_vm15 = vcmp.eq.s32.totalorder %v2270_v54, %v801_v56 }
 0x244   : > { %1660 = vmatprep.subr.msk.bf16.mxu1 %vm1659_vm9, %v1960_v57  ;;  %vm1663_vm12 = vmpackc.low %vm789_vm10, %vm788_vm8  ;;  %1626 = vmatprep.mubr.msk.f32.mxu1 %vm802_vm11, %v1961_v58  ;;  %v780_v4 = vrot.slane %v779_v62, 1  ;;  %vm1207_vm7 = vcmask 1040384   ;;  %vm1218_vm11 = vcmask 203776  }
 0x245   : > { %1662 = vmatpush3.bf16.xpose.msk.msra.mxu1 %vm1659_vm9, %v1960_v57 }
 0x246   : > { %1664 = vmatprep.subr.msk.bf16.mxu1 %vm1663_vm12, %v1960_v57  ;;  %v781_v8 = vadd.s32 %v1678_v51, %v780_v4 }
 0x24d   : > { %1666 = vmatpush3.bf16.xpose.msk.msra.mxu1 %vm1663_vm12, %v1960_v57  ;;  %vm1222_vm12 = vcmask 196608  }
 0x24e   : > { %1651 = vmatprep.subr.msk.mxu1 %vm703_vm4, %v914_v41 }
 0x254   : > { %1627 = vmatmul.mubr.msk.f32.vlgmr.msra.gmra.mrb[2].mxu1 %vm803_vm13, %v1961_v58  ;;  %v984_v59 = vpop.f32.mrb[2].mxu0 }
 0x255   : > { %v988_v60 = vadd.f32 12.0, %v984_v59  ;;  %1652 = vmatpush3.msk.msra.mxu1 %vm703_vm4, %v914_v41  ;;  %1629 = vmatprep.mubr.msk.f32.mxu1 %vm804_vm14, %v1961_v58  ;;  %v1636_v61 = vpop.f32.mrb[3].mxu0 }
 0x257   : > { %v1682_v0 = vcvt.f32.s32 %v988_v60 }
 0x258   : > { %1630 = vmatmul.mubr.msk.f32.gmra.mrb[4].mxu1 %vm805_vm15, %v1961_v58 }
 0x259   : > { %v990_v1 = vmul.u32 25, %v1682_v0  ;;  %v996_v2 = vrot.slane %v1682_v0, %v784_v48  ;;  %v1012_v3 = vrot.slane %v1682_v0, %v800_v49  ;;  %1653 = vmatprep.mubr.msk.f32.mxu1 %vm699_vm5, %v575_v63 }
 0x25b   : > { %v991_v6 = vrot.slane %v990_v1, 1  ;;  %vm997_vm0 = vcmp.eq.s32.totalorder %v582_v45, %v996_v2  ;;  %vm998_vm1 = vcmp.eq.s32.totalorder %v583_v52, %v996_v2  ;;  %vm1013_vm2 = vcmp.eq.s32.totalorder %v582_v45, %v1012_v3 }
 0x25c   : > { %vm1667_vm3 = vmpackc.low %vm998_vm1, %vm997_vm0  ;;  %1645 = vmatprep.mubr.msk.f32.mxu0 %vm1013_vm2, %v1961_v58  ;;  %vm999_vm4 = vcmp.eq.s32.totalorder %v584_v53, %v996_v2  ;;  %vm1000_vm6 = vcmp.eq.s32.totalorder %v2270_v54, %v996_v2  ;;  %1654 = vmatmul.mubr.msk.f32.vlgmr.msra.gmra.mrb[6].mxu1 %vm699_vm5, %v576_v5  ;;  %vm1014_vm9 = vcmp.eq.s32.totalorder %v583_v52, %v1012_v3 }
 0x25d   : > { %v992_v7 = vadd.s32 %v1682_v0, %v991_v6  ;;  %1668 = vmatprep.subr.msk.bf16.mxu0 %vm1667_vm3, %v1960_v57  ;;  %vm1671_vm8 = vmpackc.low %vm1000_vm6, %vm999_vm4  ;;  %vm1015_vm5 = vcmp.eq.s32.totalorder %v584_v53, %v1012_v3  ;;  %vm1016_vm10 = vcmp.eq.s32.totalorder %v2270_v54, %v1012_v3 }
 0x25e   : > { %1670 = vmatpush3.bf16.xpose.msk.msra.mxu0 %vm1667_vm3, %v1960_v57 }
 0x25f   : > { %v1206_v9 = vrot.slane %v992_v7, 7  ;;  %1672 = vmatprep.subr.msk.bf16.mxu0 %vm1671_vm8, %v1960_v57 }
 0x261   : > { %v1208_v10 = vsel %vm1207_vm7, %v781_v8, %v1206_v9 }
 0x262   : > { %1209 = vst [vmem:[%s549_s25] sm:$0x3] %v1208_v10  ;;  %s1269_s25 = sadd.s32 %s1571_s7, %s1267_s18 }
 0x263   : > { %s1572_s20 = sshll.u32 %s1269_s25, 7 }
 0x264   : > { %s2306_s1 = scalar_lea.hbm %s2453_s28, %s1572_s20 }
 0x266   : > { %1674 = vmatpush3.bf16.xpose.msk.msra.mxu0 %vm1671_vm8, %v1960_v57 }
 0x26d   : > { %1646 = vmatmul.mubr.msk.f32.vlgmr.msra.gmra.mrb[4].mxu0 %vm1014_vm9, %v1961_v58 }
 0x26e   : > { %1648 = vmatprep.mubr.msk.f32.mxu0 %vm1015_vm5, %v1961_v58 }
 0x271   : > { %1649 = vmatmul.mubr.msk.f32.gmra.mrb[6].mxu0 %vm1016_vm10, %v1961_v58 }
 0x327   : > { %v1628_v13 = vpop.f32.mrb[2].mxu1 }
 0x328   : > { %v1215_v14 = vadd.f32 %v1628_v13, %v1211_v11  ;;  %v880_v15 = vpop.f32.mrb[3].mxu1 }
 0x329   : > { %v1214_v16 = vadd.f32 %v1210_v12, %v880_v15 }
 0x32a   : > { %1220 = vst.msk [vmem:[%s2216_s11 + $0x8] sm:$0xff] %vm1218_vm11, %v1215_v14 }
 0x32b   : > { %1219 = vst.msk [vmem:[%s2216_s11] sm:$0xff] %vm1218_vm11, %v1214_v16  ;;  %v1631_v19 = vpop.f32.mrb[4].mxu1 }
 0x32c   : > { %v1217_v20 = vadd.f32 %v1631_v19, %v1213_v17  ;;  %v890_v21 = vpop.f32.mrb[5].mxu1 }
 0x32d   : > { %v1216_v22 = vadd.f32 %v1212_v18, %v890_v21 }
 0x32e   : > { %1223 = vst.msk [vmem:[%s2216_s11 + $0x18] sm:$0x1] %vm1222_vm12, %v1217_v20 }
 0x32f   : > { %1221 = vst.msk [vmem:[%s2216_s11 + $0x10] sm:$0xff] %vm1218_vm11, %v1216_v22  ;;  %v1655_v25 = vpop.f32.mrb[6].mxu1 }
 0x330   : > { %v1201_v26 = vadd.f32 %v1655_v25, %v1118_v23  ;;  %v1195_v27 = vpop.f32.mrb[7].mxu1 }
 0x331   : > { %v1196_v28 = vadd.f32 %v1195_v27, %v1113_v24 }
 0x332   : > { %1205 = vst [vmem:[%s2227_s29 + $0x8] sm:$0xff] %v1201_v26 }
 0x333   : > { %1204 = vst [vmem:[%s2227_s29] sm:$0xff] %v1196_v28 }
 0x334   : > { %1846 = shalt.err (!%p1843_p10)
}
 0x335   : > { %s1847_s29 = scalar_lea.hbm %s2306_s1, 256  ;;  %s1851_s12 = scalar_lea.hbm %s2453_s28, 2048 }
 0x336   : > { %p1848_p11 = scmp.ne.s32.totalorder %s2306_s1, %s1847_s29  ;;  %p1852_p7 = scmp.lt.u32.totalorder %s2306_s1, %s2453_s28 }
 0x337   : > { %p1853_p13 = scmp.lt.u32.totalorder %s1851_s12, %s1847_s29  ;;  %p1855_p2 = scmp.lt.u32.totalorder %s1847_s29, %s2306_s1 }
 0x338   : > { %p1849_p12 = pnand %p1848_p11, %p2454_p4 }
 0x339   : > { %p1854_p0 = por %p1853_p13, %p1852_p7 }
 0x33a   : > { %p1850_p1 = pneg %p1849_p12 }
 0x33b   : > { %p1856_p5 = por %p1855_p2, %p1854_p0 }
 0x33d   : > { %p1857_p8 = pnand %p1856_p5, %p1850_p1 }
 0x33f   : > { %1860 = shalt.err (!%p1857_p8)
}
 0x340   : > { %s1963_s17 = smov 128   ;;  %s1964_s30 = smov 256   ;;  %v1561_v29 = vld [vmem:[%s2216_s11 + $0x28] sm:$0xff]  ;;  %v1560_v30 = vld [vmem:[%s2216_s11 + $0x20] sm:$0xff]  ;;  %v1647_v31 = vpop.f32.mrb[4].mxu0  ;;  %v1562_v36 = vld [vmem:[%s2216_s11 + $0x30] sm:$0xff] }
 0x341   : > { %s1965_s13 = smov 8   ;;  %v1230_v32 = vadd.f32 %v1647_v31, %v1561_v29  ;;  %v1091_v33 = vpop.f32.mrb[5].mxu0  ;;  %v1563_v35 = vld [vmem:[%s2216_s11 + $0x38] sm:$0x1] }
 0x342   : > { %1685 = dma.vmem_to_hbm [thread:$0]  (%p2454_p4), %s2308_s22, 256, %s2306_s1, %s1238_s2, %s1963_s17, %s1964_s30, %s1965_s13   ;;  %v1229_v34 = vadd.f32 %v1560_v30, %v1091_v33 }
 0x343   : > { %1565 = vst.msk [vmem:[%s2216_s11 + $0x28] sm:$0xff] %vm1218_vm11, %v1230_v32 }
 0x344   : > { %1564 = vst.msk [vmem:[%s2216_s11 + $0x20] sm:$0xff] %vm1218_vm11, %v1229_v34  ;;  %v1650_v37 = vpop.f32.mrb[6].mxu0 }
 0x345   : > { %v1232_v38 = vadd.f32 %v1650_v37, %v1563_v35  ;;  %v1101_v39 = vpop.f32.mrb[7].mxu0 }
 0x346   : > { %v1231_v40 = vadd.f32 %v1562_v36, %v1101_v39 }
 0x347   : > { %1567 = vst.msk [vmem:[%s2216_s11 + $0x38] sm:$0x1] %vm1222_vm12, %v1232_v38 }
 0x348   : > { %1566 = vst.msk [vmem:[%s2216_s11 + $0x30] sm:$0xff] %vm1218_vm11, %v1231_v40 }
 0x349 PF: > { %s2455_s27 = sld [smem:[#allocation8_spill]]  ;;  %s2456_s24 = sld [smem:[#allocation18_spill]] }
 0x34a   : > { %p1696_p4 = scmp.ge.s32.totalorder %s1947_s26, 2 }
 0x34f   : > { %s1293_s16 = sand.u32 1, %s2455_s27   ;;  %p2457_p9 = scmp.ne.s32.totalorder %s2456_s24, 0 }
 0x350   : > { %s1294_s0 = scalar_lea.sflag [#allocation4], %s1293_s16 }
 0x351   : > { %p1692_p3 = pnand %p1696_p4, %p2457_p9 }
 0x353   : > { %1906 = dma.done.wait (!%p1692_p3), %s1294_s0, 256  }
 0x354   : > { %1908 = vsyncadd (!%p1692_p3), %s1294_s0, 4294967040  ;;  %s28_s26 = sadd.s32 1, %s1947_s26   ;;  %s2458_s17 = sld [smem:[#allocation9_spill]] }
 0x355   : > { %p25_p6 = scmp.ge.s32.totalorder %s28_s26, 10   ;;  %s2459_s18 = sld [smem:[#allocation10_spill]] }
 0x356   : > { %s2460_s19 = sld [smem:[#allocation19_spill]]  ;;  %s2461_s20 = sld [smem:[#allocation11_spill]] }
 0x357   : > { %s2462_s21 = sld [smem:[#allocation12_spill]]  ;;  %s2463_s22 = sld [smem:[#allocation13_spill]] }
 0x358   : > { %s2464_s23 = sld [smem:[#allocation14_spill]]  ;;  %s2465_s24 = sld [smem:[#allocation15_spill]] }
 0x359   : > { %s2466_s25 = sld [smem:[#allocation16_spill]]  ;;  %27 = sbr.rel (!%p25_p6) target bundleno = 21 (0x15), region = 142 }
 0x360   :  { %1322 = vsyncpa [#allocation3], 1 }
 0x361   :  { %1324 = vsyncpa [#allocation3 + $0x1], 1 }
 0x362   :  { %1325 = vsyncpa [#allocation4], 1 }
 0x363   :  { %1327 = vsyncpa [#allocation4 + $0x1], 1 }

</bundles_post_ra>
